<compile_context>
chip_gen: v5e
topology: v5e:2x2
jax: 0.10.0
libtpu: 0.0.40
codegen_flags: <defaults>
</compile_context>

<pallas_src>
import functools

import jax
import jax.numpy as jnp
import numpy as np
from jax import lax
from jax.experimental import pallas as pl
from jax.experimental.pallas import tpu as pltpu


def _round_up(x, m):
    return (x + m - 1) // m * m


def _md_mmd_kernel(x_ref, wall_ref, baux_ref, b_ref, out_ref, ent_ref, *,
                   domains, dout_pad, aux_pad, block_m, batch):
    i = pl.program_id(0)

    x = x_ref[...]                 # [BM, Din]                       bf16
    w = wall_ref[...]              # [aux_pad + K*dout_pad, Din]     bf16 (torch rows)

    # One wide MXU call: x @ W_all^T.  Transposed contraction is expressed via
    # dot_general dimension_numbers -> no transposed weight copy needed.
    y = lax.dot_general(x, w, (((1,), (1,)), ((), ())),
                        preferred_element_type=jnp.float32)   # [BM, aux_pad+K*Dpad] f32

    # ---- aux classifier logits + softmax + entropy (f32) ----
    logits = y[:, :domains] + baux_ref[...]                   # [BM, K]
    m = jnp.max(logits, axis=1, keepdims=True)
    z = logits - m
    e = jnp.exp(z)
    s = jnp.sum(e, axis=1, keepdims=True)
    p = e * pl.reciprocal(s, approx=False)                    # softmax, [BM, K]
    logp = z - jnp.log(s)

    # Mask rows that are pure batch padding so they don't pollute the entropy.
    row = lax.broadcasted_iota(jnp.int32, (block_m, 1), 0) + i * block_m
    valid = (row < batch).astype(jnp.float32)                 # [BM, 1]
    ent_ref[...] = jnp.reshape(-jnp.sum(valid * p * logp), (1, 1, 1))

    # ---- domain-weighted combination ----
    # All per-domain biases folded into a single tiny matmul p @ b, added once.
    acc = jnp.dot(p, b_ref[...], preferred_element_type=jnp.float32)  # [BM, Dpad]
    for k in range(domains):                                   # K is small & static
        yk = y[:, aux_pad + k * dout_pad: aux_pad + (k + 1) * dout_pad]
        acc = acc + p[:, k:k + 1] * yk                         # 128-aligned slices
    out_ref[...] = acc


def md_mmd_layer_forward(x, waux, baux, w_stack, b_stack, *, block_m=256):
    """x: [B, Din]; waux: [K, Din] (torch layout); baux: [K];
    w_stack: [K, Dout, Din] (torch layout); b_stack: [K, Dout]."""
    batch, din = x.shape
    domains, dout, _ = w_stack.shape

    aux_pad = 128                               # lane-aligned start of domain blocks
    dout_pad = _round_up(dout, 128)             # lane-dense output columns
    bm = min(block_m, _round_up(batch, 8))      # batch tile (rows)
    b_padded = _round_up(batch, bm)
    num_tiles = b_padded // bm

    # bf16 operands halve HBM/VMEM traffic for the dominant tensors; f32
    # accumulation is kept inside the kernel via preferred_element_type.
    x_bf = x.astype(jnp.bfloat16)
    if b_padded != batch:
        x_bf = jnp.pad(x_bf, ((0, b_padded - batch), (0, 0)))

    # Fused RHS in torch row layout [rows = output columns, cols = Din]:
    #   rows [0, aux_pad)                         : aux weight (zero padded rows)
    #   rows [aux_pad + k*dout_pad, +dout_pad)    : domain-k weight (zero padded)
    # Only reshape/pad (no transpose) -> no HBM round trip for a relayout copy.
    waux_p = jnp.pad(waux.astype(jnp.bfloat16), ((0, aux_pad - domains), (0, 0)))
    w_p = jnp.pad(w_stack.astype(jnp.bfloat16),
                  ((0, 0), (0, dout_pad - dout), (0, 0)))
    w_all = jnp.concatenate([waux_p, w_p.reshape(domains * dout_pad, din)], axis=0)

    baux_2d = baux.reshape(1, domains).astype(jnp.float32)
    b_pad = jnp.pad(b_stack.astype(jnp.float32), ((0, 0), (0, dout_pad - dout)))

    n_all = aux_pad + domains * dout_pad
    kernel = functools.partial(_md_mmd_kernel, domains=domains, dout_pad=dout_pad,
                               aux_pad=aux_pad, block_m=bm, batch=batch)

    combine, ent_part = pl.pallas_call(
        kernel,
        grid=(num_tiles,),
        in_specs=[
            pl.BlockSpec((bm, din), lambda i: (i, 0)),            # x: batch-tiled
            pl.BlockSpec((n_all, din), lambda i: (0, 0)),         # weights: resident
            pl.BlockSpec((1, domains), lambda i: (0, 0)),         # aux bias: resident
            pl.BlockSpec((domains, dout_pad), lambda i: (0, 0)),  # biases: resident
        ],
        out_specs=(
            pl.BlockSpec((bm, dout_pad), lambda i: (i, 0)),       # lane-dense output
            pl.BlockSpec((1, 1, 1), lambda i: (i, 0, 0)),         # entropy partials
        ),
        out_shape=(
            jax.ShapeDtypeStruct((b_padded, dout_pad), jnp.float32),
            jax.ShapeDtypeStruct((num_tiles, 1, 1), jnp.float32),
        ),
        compiler_params=pltpu.CompilerParams(
            # Batch tiles are fully independent (entropy is a per-tile partial),
            # so the axis can be sharded across v7x's two TensorCores.
            dimension_semantics=("parallel",),
        ),
    )(x_bf, w_all, baux_2d, b_pad)

    cluster_loss = jnp.float32(0.0)  # TODO(synk): ClusterLoss1 definition unavailable.
    aux_entropy_loss = jnp.sum(ent_part) / jnp.float32(batch)
    return combine[:batch, :dout], cluster_loss, aux_entropy_loss


def _reference(x, waux, baux, w_stack, b_stack):
    # Match the kernel's bf16 operand rounding (accumulation stays f32).
    xb = x.astype(jnp.bfloat16).astype(jnp.float32)
    wauxb = waux.astype(jnp.bfloat16).astype(jnp.float32)
    wb = w_stack.astype(jnp.bfloat16).astype(jnp.float32)
    logits = xb @ wauxb.T + baux
    p = jax.nn.softmax(logits, axis=1)
    ent = -jnp.sum(p * jax.nn.log_softmax(logits, axis=1)) / x.shape[0]
    outs = jnp.stack([xb @ wb[k].T + b_stack[k]
                      for k in range(w_stack.shape[0])], axis=2)   # [B, Dout, K]
    combine = jnp.sum(p[:, None, :] * outs, axis=2)
    return combine, ent


if __name__ == "__main__":
    configs = [
        # (B,   DIN, DOUT, K, block_m)
        (8,    32,  32,   2, 256),   # tiny: single tile, no padding
        (20,   64,  160,  3, 256),   # ragged batch + padded Dout, K=3
        (300,  32,  32,   2, 128),   # multiple batch tiles + ragged tail
    ]

    for idx, (B, DIN, DOUT, K, BM) in enumerate(configs):
        key = jax.random.fold_in(jax.random.PRNGKey(0), idx)
        kx, kwa, kba, kw, kb = jax.random.split(key, 5)

        x = jax.random.normal(kx, (B, DIN), jnp.float32)

        # Deterministic PyTorch-Linear-style init: U(-1/sqrt(fan_in), 1/sqrt(fan_in)).
        bound = 1.0 / np.sqrt(DIN)
        waux = jax.random.uniform(kwa, (K, DIN), jnp.float32, -bound, bound)
        baux = jax.random.uniform(kba, (K,), jnp.float32, -bound, bound)
        w_stack = jax.random.uniform(kw, (K, DOUT, DIN), jnp.float32, -bound, bound)
        b_stack = jax.random.uniform(kb, (K, DOUT), jnp.float32, -bound, bound)

        combine, cluster_loss, ent_loss = md_mmd_layer_forward(
            x, waux, baux, w_stack, b_stack, block_m=BM)
        jax.block_until_ready((combine, cluster_loss, ent_loss))

        ref_combine, ref_ent = _reference(x, waux, baux, w_stack, b_stack)
        # Tolerance accounts for bf16 operands (reference uses the same rounding).
        np.testing.assert_allclose(np.asarray(combine), np.asarray(ref_combine),
                                   rtol=2e-3, atol=2e-3)
        np.testing.assert_allclose(np.asarray(ent_loss), np.asarray(ref_ent),
                                   rtol=2e-3, atol=2e-3)

    print("KERNEL_OK")
</pallas_src>

<mosaic_0001>
module attributes {stable_mosaic.version = 11 : i64} {
  func.func @_md_mmd_kernel(%arg0: i32, %arg1: memref<8x32xbf16, #tpu.memory_space<vmem>>, %arg2: memref<384x32xbf16, #tpu.memory_space<vmem>>, %arg3: memref<1x2xf32, #tpu.memory_space<vmem>>, %arg4: memref<2x128xf32, #tpu.memory_space<vmem>>, %arg5: memref<8x128xf32, #tpu.memory_space<vmem>>, %arg6: memref<1x1x1xf32, #tpu.memory_space<vmem>>) attributes {dimension_semantics = [#tpu.dimension_semantics<parallel>], iteration_bounds = array<i64: 1>, scalar_prefetch = 0 : i64, scratch_operands = 0 : i64, tpu.core_type = #tpu.core_type<tc>, window_params = [{transform_indices = @transform_0, window_bounds = array<i64: 8, 32>}, {pipeline_mode = #tpu.pipeline_mode<synchronous>, transform_indices = @transform_1, window_bounds = array<i64: 384, 32>}, {pipeline_mode = #tpu.pipeline_mode<synchronous>, transform_indices = @transform_2, window_bounds = array<i64: 1, 2>}, {pipeline_mode = #tpu.pipeline_mode<synchronous>, transform_indices = @transform_3, window_bounds = array<i64: 2, 128>}, {transform_indices = @transform_4, window_bounds = array<i64: 8, 128>}, {transform_indices = @transform_5, window_bounds = array<i64: 1, 1, 1>}]} {
    %c0 = arith.constant 0 : index
    %c0_0 = arith.constant 0 : index
    %0 = vector.load %arg1[%c0, %c0_0] : memref<8x32xbf16, #tpu.memory_space<vmem>>, vector<8x32xbf16>
    %c0_1 = arith.constant 0 : index
    %c0_2 = arith.constant 0 : index
    %1 = vector.load %arg2[%c0_1, %c0_2] : memref<384x32xbf16, #tpu.memory_space<vmem>>, vector<384x32xbf16>
    %cst = arith.constant dense<0.000000e+00> : vector<8x384xf32>
    %2 = tpu.matmul %0, %1, %cst {dimension_numbers = #tpu.dot_dimension_numbers<[1], [1], [0], [0], [0, 0, 1, 0], [], []>} : vector<8x32xbf16>, vector<384x32xbf16>, vector<8x384xf32> -> vector<8x384xf32>
    %3 = vector.extract_strided_slice %2 {offsets = [0, 0], sizes = [8, 2], strides = [1, 1]} : vector<8x384xf32> to vector<8x2xf32>
    %c0_3 = arith.constant 0 : index
    %c0_4 = arith.constant 0 : index
    %4 = vector.load %arg3[%c0_3, %c0_4] : memref<1x2xf32, #tpu.memory_space<vmem>>, vector<1x2xf32>
    %5 = vector.broadcast %4 : vector<1x2xf32> to vector<8x2xf32>
    %6 = arith.addf %3, %5 : vector<8x2xf32>
    %cst_5 = arith.constant dense<0xFF800000> : vector<8xf32>
    %7 = vector.multi_reduction <maximumf>, %6, %cst_5 [1] : vector<8x2xf32> to vector<8xf32>
    %8 = vector.shape_cast %7 : vector<8xf32> to vector<8x1xf32>
    %9 = vector.broadcast %8 : vector<8x1xf32> to vector<8x2xf32>
    %10 = arith.subf %6, %9 : vector<8x2xf32>
    %11 = math.exp %10 : vector<8x2xf32>
    %cst_6 = arith.constant dense<0.000000e+00> : vector<8xf32>
    %12 = vector.multi_reduction <add>, %11, %cst_6 [1] : vector<8x2xf32> to vector<8xf32>
    %13 = vector.shape_cast %12 : vector<8xf32> to vector<8x1xf32>
    %14 = tpu.reciprocal %13 : vector<8x1xf32> -> vector<8x1xf32>
    %15 = vector.broadcast %14 : vector<8x1xf32> to vector<8x2xf32>
    %16 = arith.mulf %11, %15 : vector<8x2xf32>
    %17 = math.log %13 : vector<8x1xf32>
    %18 = vector.broadcast %17 : vector<8x1xf32> to vector<8x2xf32>
    %19 = arith.subf %10, %18 : vector<8x2xf32>
    %20 = tpu.iota {dimensions = array<i32: 0>} : vector<8x1xi32>
    %c8_i32 = arith.constant 8 : i32
    %21 = arith.muli %arg0, %c8_i32 : i32
    %22 = vector.broadcast %21 : i32 to vector<8x1xi32>
    %23 = arith.addi %20, %22 : vector<8x1xi32>
    %c8_i32_7 = arith.constant 8 : i32
    %24 = vector.broadcast %c8_i32_7 : i32 to vector<8x1xi32>
    %25 = arith.cmpi slt, %23, %24 : vector<8x1xi32>
    %26 = arith.extui %25 : vector<8x1xi1> to vector<8x1xi32>
    %27 = arith.sitofp %26 : vector<8x1xi32> to vector<8x1xf32>
    %28 = vector.broadcast %27 : vector<8x1xf32> to vector<8x2xf32>
    %29 = arith.mulf %28, %16 : vector<8x2xf32>
    %30 = arith.mulf %29, %19 : vector<8x2xf32>
    %31 = vector.shape_cast %30 : vector<8x2xf32> to vector<1x8x2xf32>
    %cst_8 = arith.constant dense<0.000000e+00> : vector<1xf32>
    %32 = vector.multi_reduction <add>, %31, %cst_8 [1, 2] : vector<1x8x2xf32> to vector<1xf32>
    %33 = vector.shape_cast %32 : vector<1xf32> to vector<1x1x1xf32>
    %34 = vector.extract %33[0, 0, 0] : f32 from vector<1x1x1xf32>
    %cst_9 = arith.constant 0.000000e+00 : f32
    %35 = arith.subf %cst_9, %34 : f32
    %36 = vector.broadcast %35 : f32 to vector<1x1x1xf32>
    %c0_10 = arith.constant 0 : index
    %c0_11 = arith.constant 0 : index
    %c0_12 = arith.constant 0 : index
    %37 = vector.load %arg6[%c0_10, %c0_11, %c0_12] : memref<1x1x1xf32, #tpu.memory_space<vmem>>, vector<1x1x1xf32>
    tpu.vector_store %arg6[%c0_10, %c0_11, %c0_12], %36 {strides = array<i32>} : memref<1x1x1xf32, #tpu.memory_space<vmem>>, vector<1x1x1xf32>,
    %c0_13 = arith.constant 0 : index
    %c0_14 = arith.constant 0 : index
    %38 = vector.load %arg4[%c0_13, %c0_14] : memref<2x128xf32, #tpu.memory_space<vmem>>, vector<2x128xf32>
    %cst_15 = arith.constant dense<0.000000e+00> : vector<8x128xf32>
    %39 = tpu.matmul %16, %38, %cst_15 {dimension_numbers = #tpu.dot_dimension_numbers<[1], [0], [0], [1], [0, 0, 1, 1], [], []>} : vector<8x2xf32>, vector<2x128xf32>, vector<8x128xf32> -> vector<8x128xf32>
    %40 = vector.extract_strided_slice %2 {offsets = [0, 128], sizes = [8, 128], strides = [1, 1]} : vector<8x384xf32> to vector<8x128xf32>
    %41 = vector.extract_strided_slice %16 {offsets = [0, 0], sizes = [8, 1], strides = [1, 1]} : vector<8x2xf32> to vector<8x1xf32>
    %42 = vector.broadcast %41 : vector<8x1xf32> to vector<8x128xf32>
    %43 = arith.mulf %42, %40 : vector<8x128xf32>
    %44 = arith.addf %39, %43 : vector<8x128xf32>
    %45 = vector.extract_strided_slice %2 {offsets = [0, 256], sizes = [8, 128], strides = [1, 1]} : vector<8x384xf32> to vector<8x128xf32>
    %46 = vector.extract_strided_slice %16 {offsets = [0, 1], sizes = [8, 1], strides = [1, 1]} : vector<8x2xf32> to vector<8x1xf32>
    %47 = vector.broadcast %46 : vector<8x1xf32> to vector<8x128xf32>
    %48 = arith.mulf %47, %45 : vector<8x128xf32>
    %49 = arith.addf %44, %48 : vector<8x128xf32>
    %c0_16 = arith.constant 0 : index
    %c0_17 = arith.constant 0 : index
    %50 = vector.load %arg5[%c0_16, %c0_17] : memref<8x128xf32, #tpu.memory_space<vmem>>, vector<8x128xf32>
    tpu.vector_store %arg5[%c0_16, %c0_17], %49 {strides = array<i32>} : memref<8x128xf32, #tpu.memory_space<vmem>>, vector<8x128xf32>,
    return
  }
  func.func @transform_0(%arg0: i32) -> (i32, i32) {
    %c0_i32 = arith.constant 0 : i32
    %c0_i32_0 = arith.constant 0 : i32
    return %arg0, %c0_i32 : i32, i32
  }
  func.func @transform_1(%arg0: i32) -> (i32, i32) {
    %c0_i32 = arith.constant 0 : i32
    %c0_i32_0 = arith.constant 0 : i32
    %c0_i32_1 = arith.constant 0 : i32
    return %c0_i32, %c0_i32_0 : i32, i32
  }
  func.func @transform_2(%arg0: i32) -> (i32, i32) {
    %c0_i32 = arith.constant 0 : i32
    %c0_i32_0 = arith.constant 0 : i32
    %c0_i32_1 = arith.constant 0 : i32
    return %c0_i32, %c0_i32_0 : i32, i32
  }
  func.func @transform_3(%arg0: i32) -> (i32, i32) {
    %c0_i32 = arith.constant 0 : i32
    %c0_i32_0 = arith.constant 0 : i32
    %c0_i32_1 = arith.constant 0 : i32
    return %c0_i32, %c0_i32_0 : i32, i32
  }
  func.func @transform_4(%arg0: i32) -> (i32, i32) {
    %c0_i32 = arith.constant 0 : i32
    %c0_i32_0 = arith.constant 0 : i32
    return %arg0, %c0_i32 : i32, i32
  }
  func.func @transform_5(%arg0: i32) -> (i32, i32, i32) {
    %c0_i32 = arith.constant 0 : i32
    %c0_i32_0 = arith.constant 0 : i32
    %c0_i32_1 = arith.constant 0 : i32
    return %arg0, %c0_i32, %c0_i32_0 : i32, i32, i32
  }
}

</mosaic_0001>

<bundles_post_ra>
// kernel: tpu_custom_call.1
= control target key start
LH: loop header
LB: loop body
LE: loop exit
PB: predicated region body
PF: predicated region fallthrough
CT: control target
= control target key end

     0   :  { %11 = vsyncpa [#allocation3], 0  ;;  %vm190_vm0 = vcmask 261120   ;;  %s792_s0 = inlined_call_operand.vmem [shape: bf16[8,32], index: 0, kind: input, shape index: {}]   ;;  %s793_s1 = inlined_call_operand.vmem [shape: bf16[384,32], index: 1, kind: input, shape index: {}]   ;;  %s794_s2 = inlined_call_operand.vmem [shape: f32[1,2], index: 2, kind: input, shape index: {}]   ;;  %s795_s3 = inlined_call_operand.vmem [shape: f32[2,128], index: 3, kind: input, shape index: {}]   ;;  %s796_s4 = inlined_call_operand.hbm [shape: f32[8,128], index: 4, kind: output, shape index: {0}]   ;;  %s797_s5 = inlined_call_operand.hbm [shape: f32[1,1,1], index: 5, kind: output, shape index: {1}]  }
   0x1   :  { %v542_v0 = vld [vmem:[%s793_s1 + $0x38] sm:$0xff] }
   0x2   :  { %v216_v1 = vsel %vm190_vm0, %v542_v0, 0 }
   0x3   :  { %12 = vsyncpa [#allocation5], 0  ;;  %266 = vmatpush.bf16.xpose.msra.mxu0 %v216_v1  ;;  %v541_v2 = vld [vmem:[%s793_s1 + $0x30] sm:$0xff]  ;;  %v540_v4 = vld [vmem:[%s793_s1 + $0x28] sm:$0xff]  ;;  %vm310_vm1 = vcmask 15360   ;;  %vm371_vm2 = vcmask 1041408  }
   0x4   :  { %v213_v3 = vsel %vm190_vm0, %v541_v2, 0  ;;  %v210_v5 = vsel %vm190_vm0, %v540_v4, 0  ;;  %v539_v6 = vld [vmem:[%s793_s1 + $0x20] sm:$0xff]  ;;  %v538_v8 = vld [vmem:[%s793_s1 + $0x18] sm:$0xff]  ;;  %v537_v10 = vld [vmem:[%s793_s1 + $0x10] sm:$0xff]  ;;  %v627_v56 = vmov 1  }
   0x5   :  { %v207_v7 = vsel %vm190_vm0, %v539_v6, 0  ;;  %v204_v9 = vsel %vm190_vm0, %v538_v8, 0  ;;  %v201_v11 = vsel %vm190_vm0, %v537_v10, 0  ;;  %v536_v12 = vld [vmem:[%s793_s1 + $0x8] sm:$0xff]  ;;  %v535_v14 = vld [vmem:[%s793_s1] sm:$0xff]  ;;  %v558_v22 = vld [vmem:[%s793_s1 + $0xb8] sm:$0xff]  ;;  %566 = vset.pattern.permute.xlu2 %v627_v56  ;;  %567 = vset.pattern.permute.xlu0 %v627_v56 }
   0x6   :  { %v198_v13 = vsel %vm190_vm0, %v536_v12, 0  ;;  %v195_v15 = vsel %vm190_vm0, %v535_v14, 0  ;;  %v696_v16 = vld [vmem:[%s792_s0] sm:$0xf]  ;;  %v264_v23 = vsel %vm190_vm0, %v558_v22, 0  ;;  %v557_v24 = vld [vmem:[%s793_s1 + $0xb0] sm:$0xff] }
   0x7   :  { %v568_v17 = vld [vmem:[%s794_s2] ss:$0 sm:$0xff]  ;;  %292 = vmatpush.bf16.xpose.msra.mxu2 %v264_v23  ;;  %v261_v25 = vsel %vm190_vm0, %v557_v24, 0  ;;  %v556_v26 = vld [vmem:[%s793_s1 + $0xa8] sm:$0xff]  ;;  %v550_v33 = vld [vmem:[%s793_s1 + $0x78] sm:$0xff]  ;;  %v628_v60 = vmov 0  }
   0x8   :  { %v258_v27 = vsel %vm190_vm0, %v556_v26, 0  ;;  %v555_v30 = vld [vmem:[%s793_s1 + $0xa0] sm:$0xff]  ;;  %v554_v34 = vld [vmem:[%s793_s1 + $0x98] sm:$0xff]  ;;  %v240_v35 = vsel %vm190_vm0, %v550_v33, 0  ;;  %v549_v39 = vld [vmem:[%s793_s1 + $0x70] sm:$0xff]  ;;  %565 = vset.pattern.permute.xlu1 %v628_v60  ;;  %s409_s20 = sshll.u32 %s796_s4, 4  ;;  %s410_s20 = int_to_ptr.hbm [resolvable:$true] %s409_s20 }
   0x9   :  { %v255_v32 = vsel %vm190_vm0, %v555_v30, 0  ;;  %279 = vmatpush.bf16.xpose.msra.mxu1 %v240_v35  ;;  %v252_v38 = vsel %vm190_vm0, %v554_v34, 0  ;;  %v553_v40 = vld [vmem:[%s793_s1 + $0x90] sm:$0xff]  ;;  %v237_v41 = vsel %vm190_vm0, %v549_v39, 0  ;;  %v548_v42 = vld [vmem:[%s793_s1 + $0x68] sm:$0xff]  ;;  %v547_v46 = vld [vmem:[%s793_s1 + $0x60] sm:$0xff] }
   0xa   :  { %v249_v43 = vsel %vm190_vm0, %v553_v40, 0  ;;  %v234_v44 = vsel %vm190_vm0, %v548_v42, 0  ;;  %v552_v45 = vld [vmem:[%s793_s1 + $0x88] sm:$0xff]  ;;  %v231_v48 = vsel %vm190_vm0, %v547_v46, 0  ;;  %v551_v49 = vld [vmem:[%s793_s1 + $0x80] sm:$0xff]  ;;  %v546_v51 = vld [vmem:[%s793_s1 + $0x58] sm:$0xff] }
   0xb   :  { %267 = vmatpush.bf16.xpose.msra.mxu0 %v213_v3  ;;  %v246_v47 = vsel %vm190_vm0, %v552_v45, 0  ;;  %v243_v50 = vsel %vm190_vm0, %v551_v49, 0  ;;  %v228_v52 = vsel %vm190_vm0, %v546_v51, 0  ;;  %v545_v53 = vld [vmem:[%s793_s1 + $0x50] sm:$0xff]  ;;  %v362_v55 = vld [vmem:[%s795_s3] sm:$0x3] }
   0xc   :  { %v225_v54 = vsel %vm190_vm0, %v545_v53, 0  ;;  %533 = vmatpush.msk.msra.mxu3 %vm371_vm2, %v362_v55  ;;  %v544_v57 = vld [vmem:[%s793_s1 + $0x48] sm:$0xff]  ;;  %v543_v59 = vld [vmem:[%s793_s1 + $0x40] sm:$0xff]  ;;  %s629_s1 = smov [#allocation2]   ;;  %s630_s21 = smov [#allocation4]   ;;  %vm360_vm7 = vcmask 0  }
   0xd   :  { %v222_v58 = vsel %vm190_vm0, %v544_v57, 0  ;;  %v219_v61 = vsel %vm190_vm0, %v543_v59, 0  ;;  %s407_s3 = sshll.u32 %s629_s1, 4  ;;  %s418_s22 = sshll.u32 %s630_s21, 4  ;;  %s408_s3 = int_to_ptr.vmem [resolvable:$true] %s407_s3  ;;  %s419_s22 = int_to_ptr.vmem [resolvable:$true] %s418_s22 }
   0xe   :  { %s420_s25 = sshll.u32 %s797_s5, 4  ;;  %s421_s25 = int_to_ptr.hbm [resolvable:$true] %s420_s25 }
   0xf   :  { %293 = vmatpush.bf16.xpose.msra.mxu2 %v261_v25 }
  0x11   :  { %280 = vmatpush.bf16.xpose.msra.mxu1 %v237_v41 }
  0x13   :  { %268 = vmatpush.bf16.xpose.msra.mxu0 %v210_v5 }
  0x17   :  { %294 = vmatpush.bf16.xpose.msra.mxu2 %v258_v27 }
  0x19   :  { %281 = vmatpush.bf16.xpose.msra.mxu1 %v234_v44 }
  0x1b   :  { %269 = vmatpush.bf16.xpose.msra.mxu0 %v207_v7 }
  0x1f   :  { %295 = vmatpush.bf16.xpose.msra.mxu2 %v255_v32 }
  0x21   :  { %282 = vmatpush.bf16.xpose.msra.mxu1 %v231_v48 }
  0x23   :  { %270 = vmatpush.bf16.xpose.msra.mxu0 %v204_v9 }
  0x27   :  { %296 = vmatpush.bf16.xpose.msra.mxu2 %v252_v38 }
  0x29   :  { %283 = vmatpush.bf16.xpose.msra.mxu1 %v228_v52 }
  0x2b   :  { %271 = vmatpush.bf16.xpose.msra.mxu0 %v201_v11 }
  0x2f   :  { %297 = vmatpush.bf16.xpose.msra.mxu2 %v249_v43 }
  0x31   :  { %284 = vmatpush.bf16.xpose.msra.mxu1 %v225_v54 }
  0x33   :  { %272 = vmatpush.bf16.xpose.msra.mxu0 %v198_v13 }
  0x37   :  { %298 = vmatpush.bf16.xpose.msra.mxu2 %v246_v47 }
  0x39   :  { %285 = vmatpush.bf16.xpose.msra.mxu1 %v222_v58 }
  0x3b   :  { %273 = vmatpush.bf16.xpose.msra.mxu0 %v195_v15 }
  0x3f   :  { %299 = vmatpush.bf16.xpose.msra.mxu2 %v243_v50 }
  0x41   :  { %286 = vmatpush.bf16.xpose.msra.mxu1 %v219_v61 }
  0x42   :  { %530 = vmatmul.msk.bf16.vlgmr.msra.gmra.mxu0 %vm190_vm0, %v696_v16 }
  0x46   :  { %532 = vmatmul.msk.bf16.vlgmr.msra.gmra.mxu2 %vm190_vm0, %v696_v16 }
  0x48   :  { %531 = vmatmul.msk.bf16.vlgmr.msra.gmra.mxu1 %vm190_vm0, %v696_v16 }
  0xbf   :  { %v275_v18 = vpop.f32.mrf.mxu0 }
  0xc0   :  { %v309_v19 = vadd.f32 %v568_v17, %v275_v18 }
  0xc2   :  { %v311_v20 = vsel %vm310_vm1, %v309_v19, -inf }
  0xc3   :  { %312 = vmax.xlane.f32.xlu0 %v311_v20 }
  0xc5   :  { %v288_v17 = vpop.f32.mrf.mxu1 }
  0xc7   :  { %v277_v21 = vpop.f32.mrf.mxu0 }
  0xc9   :  { %v301_v15 = vpop.f32.mrf.mxu2 }
  0xd1   :  { %v303_v16 = vpop.f32.mrf.mxu2 }
 0x136   :  { %v313_v28 = vpop.xlane.xlu0 %312 }
 0x137   :  { %v716_v29 = vsub.f32 %v309_v19, %v313_v28  ;;  %v290_v19 = vpop.f32.mrf.mxu1 }
 0x139   :  { %v315_v31 = vmul.f32 1.442695, %v716_v29 }
 0x13b   :  { %569 = vpow2.f32 %v315_v31 }
 0x141   :  { %v730_v36 = vpop.eup %569 }
 0x142   :  { %v317_v37 = vsel %vm310_vm1, %v730_v36, 0.0 }
 0x143   :  { %318 = vadd.xlane.f32.xlu0 %v317_v37 }
 0x1b6   :  { %v319_v62 = vpop.xlane.xlu0 %318 }
 0x1b7   :  { %571 = vrcp.f32 %v319_v62  ;;  %v331_v3 = vand.u32 2147483648, %v319_v62  ;;  %v329_v5 = vand.u32 2147483647, %v319_v62  ;;  %vm325_vm4 = vweird.f32 %v319_v62 }
 0x1b8   :  { %573 = vlog2.f32 %v319_v62 }
 0x1b9   :  { %v332_v8 = vor.u32 1.1754944e-38, %v331_v3  ;;  %vm330_vm6 = vcmp.eq.f32.partialorder %v329_v5, 8.507059e+37 }
 0x1bd   :  { %v572_v63 = vpop.eup %571 }
 0x1be   :  { %v321_v0 = vmul.f32 %v572_v63, %v319_v62  ;;  %v574_v2 = vpop.eup %573  ;;  %vm326_vm3 = vweird.f32 %v572_v63 }
 0x1bf   :  { %v336_v7 = vmul.f32 0.6931472, %v574_v2  ;;  %vm327_vm5 = vmor %vm325_vm4, %vm326_vm3 }
 0x1c0   :  { %v322_v1 = vsub.f32 1.0, %v321_v0 }
 0x1c1   :  { %v337_v12 = vsub.f32 %v716_v29, %v336_v7 }
 0x1c2   :  { %v323_v4 = vmul.f32 %v572_v63, %v322_v1 }
 0x1c4   :  { %v324_v6 = vadd.f32 %v572_v63, %v323_v4 }
 0x1c6   :  { %v328_v9 = vsel %vm327_vm5, %v572_v63, %v324_v6 }
 0x1c7   :  { %v333_v10 = vsel %vm330_vm6, %v332_v8, %v328_v9 }
 0x1c8   :  { %v334_v11 = vmul.f32 %v730_v36, %v333_v10 }
 0x1ca   :  { %396 = vperm.xlu2 %566, %v334_v11   ;;  %534 = vmatmul.msk.f32.vlgmr.msra.gmra.mxu3 %vm310_vm1, %v334_v11  ;;  %v347_v13 = vmul.f32 %v337_v12, %v334_v11 }
 0x1cc   :  { %v348_v14 = vsel %vm310_vm1, %v347_v13, 0.0 }
 0x1cd   :  { %349 = vadd.xlane.f32.xlu1 %v348_v14 }
 0x1e6   :  { %365 = vperm.xlu1 %565, %v334_v11  }
 0x224   :  { %v397_v26 = vpop.permute.xlu2 %396 }
 0x225   :  { %v399_v30 = vmul.f32 %v397_v26, %v301_v15 }
 0x240   :  { %v350_v18 = vpop.xlane.xlu1 %349 }
 0x241   :  { %v351_v20 = vrot.slane %v350_v18, 4 }
 0x243   :  { %v352_v21 = vadd.f32 %v351_v20, %v350_v18 }
 0x245   :  { %v353_v22 = vrot.slane %v352_v21, 2 }
 0x247   :  { %v354_v23 = vadd.f32 %v353_v22, %v352_v21 }
 0x249   :  { %v355_v24 = vrot.slane %v354_v23, 1 }
 0x24b   :  { %v356_v25 = vadd.f32 %v355_v24, %v354_v23 }
 0x24d   :  { %559 = vpush %v356_v25  ;;  %v392_v29 = vpop.f32.mrf.mxu3 }
 0x258   :  { %v366_v27 = vpop.permute.xlu1 %365 }
 0x259   :  { %v368_v28 = vmul.f32 %v366_v27, %v288_v17 }
 0x25b   :  { %v393_v31 = vadd.f32 %v392_v29, %v368_v28 }
 0x25d   :  { %v400_v32 = vadd.f32 %v399_v30, %v393_v31 }
 0x25f   :  { %401 = vst [vmem:[#allocation2] sm:$0xff] %v400_v32 }
 0x260   :  { %412 = dma.vmem_to_hbm [thread:$0]  %s408_s3, 128, %s410_s20, [#allocation3]  }
 0x27e   :  { %s560_s26 = spop %559 }
 0x27f   :  { %s358_s27 = ssub.f32 0.0, %s560_s26 }
 0x281   :  { %v359_v33 = vstv %s358_s27 }
 0x282   :  { %361 = vst.msk [vmem:[#allocation4] sm:$0x1] %vm360_vm7, %v359_v33 }
 0x283   :  { %423 = dma.vmem_to_hbm [thread:$0]  %s419_s22, 16, %s421_s25, [#allocation5]  }
 0x284   :  { %623 = dma.done.wait [#allocation3], 128  }
 0x285   :  { %624 = vsyncadd [#allocation3], 4294967168 }
 0x286   :  { %625 = dma.done.wait [#allocation5], 16  }
 0x287   :  { %626 = vsyncadd [#allocation5], 4294967280 }
 0x288   :  { %432 = vsyncpa [#allocation3], 1 }
 0x289   :  { %433 = vsyncpa [#allocation5], 1 }

</bundles_post_ra>
